<compile_context>
chip_gen: v7x
topology: tpu7x:2x2x1
jax: 0.10.0
libtpu: 0.0.40
codegen_flags: <defaults>
</compile_context>

<pallas_src>
import functools

import jax
import jax.numpy as jnp
from jax import lax
from jax.experimental import pallas as pl
from jax.experimental.pallas import tpu as pltpu  # noqa: F401  (TPU backend import)

# Hyperparameters implied by the script.
BLOCK_SIZE = 8                 # T
N_EMBD = 32                    # C
N_HEADS = 4                    # H
HEAD_DIM = N_EMBD // N_HEADS   # D = 8
BATCH = 4                      # batch_size


def _mha_kernel(x_ref, wqkv_ref, wp_ref, bp_ref, o_ref, *, batch, seq, heads, head_dim):
    """Whole problem in one invocation. Rows of x_ref/o_ref are (b, t) flattened."""
    B, T, H, D = batch, seq, heads, head_dim
    N = B * T          # 32 packed (batch, time) rows  -> sublanes
    C = H * D          # 32 embedding dim
    HN = H * N         # 128 lanes of the block-diagonal score slab

    log2_t = T.bit_length() - 1
    log2_n = N.bit_length() - 1
    log2_d = D.bit_length() - 1

    # NOTE: the PyTorch module scales by n_embd (C) ** -0.5, not head_dim ** -0.5. Intentional.
    scale = jnp.float32(C) ** jnp.float32(-0.5)

    x = x_ref[...]                                                       # (N, C)

    # One lane-dense fused QKV projection: (N, C) @ (C, 3*C) on the MXU.
    qkv = jnp.dot(x, wqkv_ref[...], preferred_element_type=jnp.float32)  # (N, 3C)
    q = qkv[:, :C]            # head h occupies lanes [h*D, (h+1)*D)
    k = qkv[:, C:2 * C]
    v = qkv[:, 2 * C:]

    # ---- one-time masks / selectors (iota + shifts; all dims are powers of two) ----
    # Block-diag placement mask for K/V: (HN, C); row block h (N rows) pairs with col block h (D cols).
    i0 = lax.broadcasted_iota(jnp.int32, (HN, C), 0)
    j0 = lax.broadcasted_iota(jnp.int32, (HN, C), 1)
    kv_mask = (i0 >> log2_n) == (j0 >> log2_d)

    # Score validity mask: (N, HN). Causal within each sequence AND block-diagonal across
    # the batch; identical for every 32-lane head block.
    r = lax.broadcasted_iota(jnp.int32, (N, HN), 0)        # packed (b, t) query row
    c = lax.broadcasted_iota(jnp.int32, (N, HN), 1)        # packed (head, key) lane
    m = c & (N - 1)                                        # key row within its head block
    valid = jnp.logical_and((r >> log2_t) == (m >> log2_t),
                            (r & (T - 1)) >= (m & (T - 1)))

    # Block-ones matrix for the per-head (segmented) softmax denominator: (HN, HN).
    a = lax.broadcasted_iota(jnp.int32, (HN, HN), 0)
    b = lax.broadcasted_iota(jnp.int32, (HN, HN), 1)
    seg_sum = ((a >> log2_n) == (b >> log2_n)).astype(jnp.float32)

    # ---- block-diagonal K and V (tile along sublanes, zero off-diagonal head blocks) ----
    k_bd = jnp.where(kv_mask, jnp.concatenate([k] * H, axis=0), 0.0)     # (HN, C)
    v_bd = jnp.where(kv_mask, jnp.concatenate([v] * H, axis=0), 0.0)     # (HN, C)

    # All heads' scores in ONE MXU matmul (rhs contracted on its lane dim, like q @ K_bd^T):
    # s[n, h*N + m] = <q_h[n, :], k_h[m, :]>.
    s = lax.dot_general(q, k_bd, (((1,), (1,)), ((), ())),
                        preferred_element_type=jnp.float32) * scale      # (N, HN)
    # Every row keeps its own diagonal in every head block, so the row max stays finite.
    s = jnp.where(valid, s, -jnp.inf)

    # Stable softmax per head block. Subtracting the GLOBAL row max (over all head blocks) is
    # mathematically exact — it is a constant shift within each 32-lane segment — and is
    # numerically safe unless one head's scores sit ~87 below another head's max (impossible at
    # these C**-0.5-scaled magnitudes). This avoids any lane-segmented max machinery.
    m_row = jnp.max(s, axis=-1, keepdims=True)                           # (N, 1)
    e = jnp.exp(s - m_row)                                               # masked entries -> exactly 0
    # Per-head row sums, broadcast back across each 32-lane block, via one block-ones matmul.
    denom = jnp.dot(e, seg_sum, preferred_element_type=jnp.float32)      # (N, HN)
    # approx=True would use the idle EUP slot, but exact reciprocal keeps the 1e-4 check tight.
    p = e * pl.reciprocal(denom, approx=False)

    # p @ block-diag(V) yields the already head-concatenated (N, C) tile — no transpose/relayout.
    o = jnp.dot(p, v_bd, preferred_element_type=jnp.float32)             # (N, C)

    # Output projection + bias (kept explicit rather than pre-folded into V to avoid rounding drift).
    y = jnp.dot(o, wp_ref[...], preferred_element_type=jnp.float32) + bp_ref[...]
    o_ref[...] = y.astype(o_ref.dtype)


@jax.jit
def multi_head_attention(x, wq, wk, wv, wp_t, bp):
    """x: (B, T, C); wq/wk/wv: (H, C, D) (Linear weights pre-transposed); wp_t: (C, C); bp: (1, C)."""
    B, T, C = x.shape
    H, _, D = wq.shape
    N = B * T

    # In-kernel masks use shift/and; the module's dims (T=8, B=4, D=8) satisfy this.
    for dim in (T, N, D):
        assert dim & (dim - 1) == 0, "kernel mask construction assumes power-of-two dims"

    # Pack Q/K/V into one (C, 3*C) matrix (head-major columns) -> single MXU matmul in-kernel.
    def flat(w):                                   # (H, C, D) -> (C, H*D)
        return jnp.transpose(w, (1, 0, 2)).reshape(C, H * D)
    w_qkv = jnp.concatenate([flat(wq), flat(wk), flat(wv)], axis=-1)     # (C, 3C)

    x2 = x.reshape(N, C)                           # fold batch into the sublane axis

    kernel = functools.partial(_mha_kernel, batch=B, seq=T, heads=H, head_dim=D)
    y = pl.pallas_call(
        kernel,
        out_shape=jax.ShapeDtypeStruct((N, C), x.dtype),
        grid=(1,),                                 # single invocation: no serial batch loop
        in_specs=[
            pl.BlockSpec((N, C), lambda i: (0, 0)),
            pl.BlockSpec((C, 3 * H * D), lambda i: (0, 0)),
            pl.BlockSpec((C, C), lambda i: (0, 0)),
            pl.BlockSpec((1, C), lambda i: (0, 0)),
        ],
        out_specs=pl.BlockSpec((N, C), lambda i: (0, 0)),
    )(x2, w_qkv, wp_t, bp)
    return y.reshape(B, T, C)


def _reference(x, wq, wk, wv, wp_t, bp):
    """Plain-JAX mirror of the PyTorch forward for verification."""
    B, T, C = x.shape
    q = jnp.einsum('btc,hcd->bhtd', x, wq)
    k = jnp.einsum('btc,hcd->bhtd', x, wk)
    v = jnp.einsum('btc,hcd->bhtd', x, wv)
    s = jnp.einsum('bhtd,bhsd->bhts', q, k) * (C ** -0.5)
    mask = jnp.tril(jnp.ones((T, T), dtype=bool))
    s = jnp.where(mask[None, None], s, -jnp.inf)
    p = jax.nn.softmax(s, axis=-1)
    o = jnp.einsum('bhts,bhsd->bhtd', p, v)
    o = jnp.transpose(o, (0, 2, 1, 3)).reshape(B, T, C)
    return o @ wp_t + bp[0]


if __name__ == "__main__":
    key = jax.random.PRNGKey(0)
    ks = jax.random.split(key, 6)

    B, T, C, H, D = BATCH, BLOCK_SIZE, N_EMBD, N_HEADS, HEAD_DIM

    # Deterministic synthetic parameters (nn.Linear layouts, stored pre-transposed: x @ W).
    x = jax.random.normal(ks[0], (B, T, C), dtype=jnp.float32)
    wq = jax.random.normal(ks[1], (H, C, D), dtype=jnp.float32) * 0.1   # key/query/value Linear(C, D).T per head
    wk = jax.random.normal(ks[2], (H, C, D), dtype=jnp.float32) * 0.1
    wv = jax.random.normal(ks[3], (H, C, D), dtype=jnp.float32) * 0.1
    wp_t = jax.random.normal(ks[4], (C, C), dtype=jnp.float32) * 0.1    # proj Linear(C, C).T
    bp = jax.random.normal(ks[5], (1, C), dtype=jnp.float32) * 0.1      # proj bias

    out = multi_head_attention(x, wq, wk, wv, wp_t, bp)
    out = jax.block_until_ready(out)

    ref = _reference(x, wq, wk, wv, wp_t, bp)
    assert out.shape == (B, T, C)
    assert jnp.allclose(out, ref, atol=1e-4, rtol=1e-4), "mismatch vs reference"

    print("KERNEL_OK")
</pallas_src>

<mosaic_0001>
module attributes {stable_mosaic.version = 11 : i64} {
  func.func @_mha_kernel(%arg0: i32, %arg1: memref<32x32xf32, #tpu.memory_space<vmem>>, %arg2: memref<32x96xf32, #tpu.memory_space<vmem>>, %arg3: memref<32x32xf32, #tpu.memory_space<vmem>>, %arg4: memref<1x32xf32, #tpu.memory_space<vmem>>, %arg5: memref<32x32xf32, #tpu.memory_space<vmem>>) attributes {dimension_semantics = [#tpu.dimension_semantics<arbitrary>], iteration_bounds = array<i64: 1>, scalar_prefetch = 0 : i64, scratch_operands = 0 : i64, tpu.core_type = #tpu.core_type<tc>, window_params = [{pipeline_mode = #tpu.pipeline_mode<synchronous>, transform_indices = @transform_0, window_bounds = array<i64: 32, 32>}, {pipeline_mode = #tpu.pipeline_mode<synchronous>, transform_indices = @transform_1, window_bounds = array<i64: 32, 96>}, {pipeline_mode = #tpu.pipeline_mode<synchronous>, transform_indices = @transform_2, window_bounds = array<i64: 32, 32>}, {pipeline_mode = #tpu.pipeline_mode<synchronous>, transform_indices = @transform_3, window_bounds = array<i64: 1, 32>}, {pipeline_mode = #tpu.pipeline_mode<synchronous>, transform_indices = @transform_4, window_bounds = array<i64: 32, 32>}]} {
    %cst = arith.constant 3.200000e+01 : f32
    %cst_0 = arith.constant -5.000000e-01 : f32
    %0 = math.powf %cst, %cst_0 : f32
    %c0 = arith.constant 0 : index
    %c0_1 = arith.constant 0 : index
    %1 = vector.load %arg1[%c0, %c0_1] : memref<32x32xf32, #tpu.memory_space<vmem>>, vector<32x32xf32>
    %c0_2 = arith.constant 0 : index
    %c0_3 = arith.constant 0 : index
    %2 = vector.load %arg2[%c0_2, %c0_3] : memref<32x96xf32, #tpu.memory_space<vmem>>, vector<32x96xf32>
    %cst_4 = arith.constant dense<0.000000e+00> : vector<32x96xf32>
    %3 = tpu.matmul %1, %2, %cst_4 {dimension_numbers = #tpu.dot_dimension_numbers<[1], [0], [0], [1], [0, 0, 1, 1], [], []>} : vector<32x32xf32>, vector<32x96xf32>, vector<32x96xf32> -> vector<32x96xf32>
    %4 = vector.extract_strided_slice %3 {offsets = [0, 0], sizes = [32, 32], strides = [1, 1]} : vector<32x96xf32> to vector<32x32xf32>
    %5 = vector.extract_strided_slice %3 {offsets = [0, 32], sizes = [32, 32], strides = [1, 1]} : vector<32x96xf32> to vector<32x32xf32>
    %6 = vector.extract_strided_slice %3 {offsets = [0, 64], sizes = [32, 32], strides = [1, 1]} : vector<32x96xf32> to vector<32x32xf32>
    %7 = tpu.iota {dimensions = array<i32: 0>} : vector<128x32xi32>
    %8 = tpu.iota {dimensions = array<i32: 1>} : vector<128x32xi32>
    %c5_i32 = arith.constant 5 : i32
    %9 = vector.broadcast %c5_i32 : i32 to vector<128x32xi32>
    %10 = arith.shrsi %7, %9 : vector<128x32xi32>
    %c3_i32 = arith.constant 3 : i32
    %11 = vector.broadcast %c3_i32 : i32 to vector<128x32xi32>
    %12 = arith.shrsi %8, %11 : vector<128x32xi32>
    %13 = arith.cmpi eq, %10, %12 : vector<128x32xi32>
    %14 = tpu.iota {dimensions = array<i32: 0>} : vector<32x128xi32>
    %15 = tpu.iota {dimensions = array<i32: 1>} : vector<32x128xi32>
    %c31_i32 = arith.constant 31 : i32
    %16 = vector.broadcast %c31_i32 : i32 to vector<32x128xi32>
    %17 = arith.andi %15, %16 : vector<32x128xi32>
    %c3_i32_5 = arith.constant 3 : i32
    %18 = vector.broadcast %c3_i32_5 : i32 to vector<32x128xi32>
    %19 = arith.shrsi %14, %18 : vector<32x128xi32>
    %c3_i32_6 = arith.constant 3 : i32
    %20 = vector.broadcast %c3_i32_6 : i32 to vector<32x128xi32>
    %21 = arith.shrsi %17, %20 : vector<32x128xi32>
    %22 = arith.cmpi eq, %19, %21 : vector<32x128xi32>
    %c7_i32 = arith.constant 7 : i32
    %23 = vector.broadcast %c7_i32 : i32 to vector<32x128xi32>
    %24 = arith.andi %14, %23 : vector<32x128xi32>
    %c7_i32_7 = arith.constant 7 : i32
    %25 = vector.broadcast %c7_i32_7 : i32 to vector<32x128xi32>
    %26 = arith.andi %17, %25 : vector<32x128xi32>
    %27 = arith.cmpi sge, %24, %26 : vector<32x128xi32>
    %28 = arith.andi %22, %27 : vector<32x128xi1>
    %29 = tpu.iota {dimensions = array<i32: 0>} : vector<128x128xi32>
    %30 = tpu.iota {dimensions = array<i32: 1>} : vector<128x128xi32>
    %c5_i32_8 = arith.constant 5 : i32
    %31 = vector.broadcast %c5_i32_8 : i32 to vector<128x128xi32>
    %32 = arith.shrsi %29, %31 : vector<128x128xi32>
    %c5_i32_9 = arith.constant 5 : i32
    %33 = vector.broadcast %c5_i32_9 : i32 to vector<128x128xi32>
    %34 = arith.shrsi %30, %33 : vector<128x128xi32>
    %35 = arith.cmpi eq, %32, %34 : vector<128x128xi32>
    %36 = arith.extui %35 : vector<128x128xi1> to vector<128x128xi32>
    %37 = arith.sitofp %36 : vector<128x128xi32> to vector<128x128xf32>
    %38 = tpu.concatenate %5, %5, %5, %5 in 0 : vector<32x32xf32>, vector<32x32xf32>, vector<32x32xf32>, vector<32x32xf32> -> vector<128x32xf32>
    %cst_10 = arith.constant 0.000000e+00 : f32
    %39 = vector.broadcast %cst_10 : f32 to vector<128x32xf32>
    %40 = arith.select %13, %38, %39 : vector<128x32xi1>, vector<128x32xf32>
    %41 = tpu.concatenate %6, %6, %6, %6 in 0 : vector<32x32xf32>, vector<32x32xf32>, vector<32x32xf32>, vector<32x32xf32> -> vector<128x32xf32>
    %cst_11 = arith.constant 0.000000e+00 : f32
    %42 = vector.broadcast %cst_11 : f32 to vector<128x32xf32>
    %43 = arith.select %13, %41, %42 : vector<128x32xi1>, vector<128x32xf32>
    %cst_12 = arith.constant dense<0.000000e+00> : vector<32x128xf32>
    %44 = tpu.matmul %4, %40, %cst_12 {dimension_numbers = #tpu.dot_dimension_numbers<[1], [1], [0], [0], [0, 0, 1, 0], [], []>} : vector<32x32xf32>, vector<128x32xf32>, vector<32x128xf32> -> vector<32x128xf32>
    %45 = vector.broadcast %0 : f32 to vector<32x128xf32>
    %46 = arith.mulf %44, %45 : vector<32x128xf32>
    %cst_13 = arith.constant 0xFF800000 : f32
    %47 = vector.broadcast %cst_13 : f32 to vector<32x128xf32>
    %48 = arith.select %28, %46, %47 : vector<32x128xi1>, vector<32x128xf32>
    %cst_14 = arith.constant dense<0xFF800000> : vector<32xf32>
    %49 = vector.multi_reduction <maximumf>, %48, %cst_14 [1] : vector<32x128xf32> to vector<32xf32>
    %50 = vector.shape_cast %49 : vector<32xf32> to vector<32x1xf32>
    %51 = vector.broadcast %50 : vector<32x1xf32> to vector<32x128xf32>
    %52 = arith.subf %48, %51 : vector<32x128xf32>
    %53 = math.exp %52 : vector<32x128xf32>
    %cst_15 = arith.constant dense<0.000000e+00> : vector<32x128xf32>
    %54 = tpu.matmul %53, %37, %cst_15 {dimension_numbers = #tpu.dot_dimension_numbers<[1], [0], [0], [1], [0, 0, 1, 1], [], []>} : vector<32x128xf32>, vector<128x128xf32>, vector<32x128xf32> -> vector<32x128xf32>
    %55 = tpu.reciprocal %54 : vector<32x128xf32> -> vector<32x128xf32>
    %56 = arith.mulf %53, %55 : vector<32x128xf32>
    %cst_16 = arith.constant dense<0.000000e+00> : vector<32x32xf32>
    %57 = tpu.matmul %56, %43, %cst_16 {dimension_numbers = #tpu.dot_dimension_numbers<[1], [0], [0], [1], [0, 0, 1, 1], [], []>} : vector<32x128xf32>, vector<128x32xf32>, vector<32x32xf32> -> vector<32x32xf32>
    %c0_17 = arith.constant 0 : index
    %c0_18 = arith.constant 0 : index
    %58 = vector.load %arg3[%c0_17, %c0_18] : memref<32x32xf32, #tpu.memory_space<vmem>>, vector<32x32xf32>
    %cst_19 = arith.constant dense<0.000000e+00> : vector<32x32xf32>
    %59 = tpu.matmul %57, %58, %cst_19 {dimension_numbers = #tpu.dot_dimension_numbers<[1], [0], [0], [1], [0, 0, 1, 1], [], []>} : vector<32x32xf32>, vector<32x32xf32>, vector<32x32xf32> -> vector<32x32xf32>
    %c0_20 = arith.constant 0 : index
    %c0_21 = arith.constant 0 : index
    %60 = vector.load %arg4[%c0_20, %c0_21] : memref<1x32xf32, #tpu.memory_space<vmem>>, vector<1x32xf32>
    %61 = vector.broadcast %60 : vector<1x32xf32> to vector<32x32xf32>
    %62 = arith.addf %59, %61 : vector<32x32xf32>
    %c0_22 = arith.constant 0 : index
    %c0_23 = arith.constant 0 : index
    %63 = vector.load %arg5[%c0_22, %c0_23] : memref<32x32xf32, #tpu.memory_space<vmem>>, vector<32x32xf32>
    tpu.vector_store %arg5[%c0_22, %c0_23], %62 {strides = array<i32>} : memref<32x32xf32, #tpu.memory_space<vmem>>, vector<32x32xf32>,
    return
  }
  func.func @transform_0(%arg0: i32) -> (i32, i32) {
    %c0_i32 = arith.constant 0 : i32
    %c0_i32_0 = arith.constant 0 : i32
    %c0_i32_1 = arith.constant 0 : i32
    return %c0_i32, %c0_i32_0 : i32, i32
  }
  func.func @transform_1(%arg0: i32) -> (i32, i32) {
    %c0_i32 = arith.constant 0 : i32
    %c0_i32_0 = arith.constant 0 : i32
    %c0_i32_1 = arith.constant 0 : i32
    return %c0_i32, %c0_i32_0 : i32, i32
  }
  func.func @transform_2(%arg0: i32) -> (i32, i32) {
    %c0_i32 = arith.constant 0 : i32
    %c0_i32_0 = arith.constant 0 : i32
    %c0_i32_1 = arith.constant 0 : i32
    return %c0_i32, %c0_i32_0 : i32, i32
  }
  func.func @transform_3(%arg0: i32) -> (i32, i32) {
    %c0_i32 = arith.constant 0 : i32
    %c0_i32_0 = arith.constant 0 : i32
    %c0_i32_1 = arith.constant 0 : i32
    return %c0_i32, %c0_i32_0 : i32, i32
  }
  func.func @transform_4(%arg0: i32) -> (i32, i32) {
    %c0_i32 = arith.constant 0 : i32
    %c0_i32_0 = arith.constant 0 : i32
    %c0_i32_1 = arith.constant 0 : i32
    return %c0_i32, %c0_i32_0 : i32, i32
  }
}

</mosaic_0001>

<bundles_post_ra>
// kernel: multi_head_attention.1
= control target key start
LH: loop header
LB: loop body
LE: loop exit
PB: predicated region body
PF: predicated region fallthrough
CT: control target
= control target key end

     0   :  { %vm1823_vm0 = vcmask 261120   ;;  %s1818_s0 = inlined_call_operand.vmem [shape: f32[32,32], index: 0, kind: input, shape index: {}]   ;;  %s1819_s1 = inlined_call_operand.vmem [shape: f32[32,96], index: 1, kind: input, shape index: {}]   ;;  %s1820_s2 = inlined_call_operand.vmem [shape: f32[32,32], index: 2, kind: input, shape index: {}]   ;;  %s1821_s3 = inlined_call_operand.vmem [shape: f32[1,32], index: 3, kind: input, shape index: {}]   ;;  %s1822_s4 = inlined_call_operand.hbm [shape: f32[32,32], index: 4, kind: output, shape index: {}]  }
   0x1   :  { %v22_v0 = vld [vmem:[%s1819_s1] sm:$0xff]  ;;  %v23_v1 = vld [vmem:[%s1819_s1 + $0x8] sm:$0xff]  ;;  %v24_v2 = vld [vmem:[%s1819_s1 + $0x10] sm:$0xff] }
   0x2   :  { %v1078_v3 = vpack.c.bf16 %v23_v1, %v22_v0  ;;  %v25_v4 = vld [vmem:[%s1819_s1 + $0x18] sm:$0xff]  ;;  %v18_v5 = vld [vmem:[%s1818_s0] sm:$0xff] }
   0x3   :  { %v1082_v6 = vpack.c.bf16 %v25_v4, %v24_v2  ;;  %944 = vmatprep.mubr.msk.f32.mxu0 %vm1823_vm0, %v18_v5 }
   0x4   :  { %9 = vsyncpa [#allocation3], 0  ;;  %1079 = vmatprep.subr.bf16.mxu0 %v1078_v3  ;;  %v19_v7 = vld [vmem:[%s1818_s0 + $0x8] sm:$0xff]  ;;  %v20_v8 = vld [vmem:[%s1818_s0 + $0x10] sm:$0xff]  ;;  %s1288_s30 = smov 96   ;;  %v124_v16 = vlaneseq  ;;  %v1848_v57 = vmov 0 }
   0x5   :  { %1081 = vmatpush3.bf16.msra.mxu0 %v1078_v3  ;;  %v21_v9 = vld [vmem:[%s1818_s0 + $0x18] sm:$0xff]  ;;  %vm1415_vm3 = vmpackc.low %vm1823_vm0, %vm1823_vm0  ;;  %v1850_v58 = vmov 0  ;;  %v1852_v2 = vmov 0  ;;  %v1854_v3 = vmov 0  ;;  %s1290_s0 = smov 64   ;;  %v655_v29 = vld [vmem:[%s1820_s2] sm:$0xff] }
   0x6   :  { %1083 = vmatprep.subr.bf16.mxu0 %v1082_v6  ;;  %v1363_v17 = vshrl.u32 %v124_v16, 7  ;;  %v1368_v19 = vand.u32 127, %v124_v16  ;;  %v1856_v16 = vmov 0  ;;  %v656_v40 = vld [vmem:[%s1820_s2 + $0x8] sm:$0xff]  ;;  %v657_v41 = vld [vmem:[%s1820_s2 + $0x10] sm:$0xff]  ;;  %v658_v49 = vld [vmem:[%s1820_s2 + $0x18] sm:$0xff] }
   0x7   :  { %v1214_v47 = vpack.c.bf16 %v656_v40, %v655_v29  ;;  %s1291_s14 = smov [#allocation2]  }
   0x8   :  { %v1366_v18 = vadd.s32 8, %v1363_v17  ;;  %v143_v20 = vshra.s32 %v1363_v17, 5  ;;  %v1373_v22 = vshra.s32 %v1368_v19, 3  ;;  %v1376_v23 = vadd.s32 16, %v1363_v17  ;;  %s772_s15 = sshll.u32 %s1291_s14, 4  ;;  %s773_s15 = int_to_ptr.vmem [resolvable:$true] %s772_s15 }
   0x9   :  { %1085 = vmatpush3.bf16.msra.mxu0 %v1082_v6  ;;  %v1379_v24 = vadd.s32 24, %v1363_v17  ;;  %v1382_v25 = vadd.s32 32, %v1363_v17  ;;  %v1385_v26 = vadd.s32 40, %v1363_v17  ;;  %v1464_v50 = vadd.s32 48, %v1363_v17  ;;  %p1269_p1 = scmp.lt.s32.totalorder %s773_s15, %s773_s15 }
   0xa   :  { %v144_v21 = vshra.s32 %v1366_v18, 5  ;;  %vm1390_vm1 = vcmp.eq.s32.totalorder %v143_v20, %v1373_v22  ;;  %v145_v30 = vshra.s32 %v1376_v23, 5  ;;  %v1467_v51 = vadd.s32 56, %v1363_v17 }
   0xb   :  { %v146_v31 = vshra.s32 %v1379_v24, 5  ;;  %v147_v37 = vshra.s32 %v1382_v25, 5  ;;  %v148_v42 = vshra.s32 %v1385_v26, 5  ;;  %v149_v54 = vshra.s32 %v1464_v50, 5 }
   0xc   :  { %945 = vmatmul.mubr.msk.f32.vlgmr.msra.gmra.mrb[0].mxu0 %vm1823_vm0, %v19_v7  ;;  %vm1397_vm2 = vcmp.eq.s32.totalorder %v144_v21, %v1373_v22  ;;  %vm1423_vm4 = vcmp.eq.s32.totalorder %v145_v30, %v1373_v22  ;;  %v150_v55 = vshra.s32 %v1467_v51, 5  ;;  %v1498_v59 = vadd.s32 64, %v1363_v17 }
   0xd   :  { %947 = vmatprep.mubr.msk.f32.mxu0 %vm1823_vm0, %v20_v8  ;;  %vm1430_vm5 = vcmp.eq.s32.totalorder %v146_v31, %v1373_v22  ;;  %vm1452_vm6 = vcmp.eq.s32.totalorder %v147_v37, %v1373_v22  ;;  %vm1459_vm7 = vcmp.eq.s32.totalorder %v148_v42, %v1373_v22  ;;  %vm1486_vm8 = vcmp.eq.s32.totalorder %v149_v54, %v1373_v22 }
   0xe   :  { %v1849_v57 = vsel %vm1486_vm8, 4294967295, %v1848_v57  ;;  %vm1493_vm9 = vcmp.eq.s32.totalorder %v150_v55, %v1373_v22  ;;  %v1501_v60 = vadd.s32 72, %v1363_v17  ;;  %v151_v63 = vshra.s32 %v1498_v59, 5 }
   0xf   :  { %v1851_v58 = vsel %vm1493_vm9, 4294967295, %v1850_v58  ;;  %v1530_v4 = vadd.s32 80, %v1363_v17  ;;  %v1533_v5 = vadd.s32 88, %v1363_v17  ;;  %v178_v26 = vshra.s32 %v1366_v18, 3 }
  0x10   :  { %948 = vmatmul.mubr.msk.f32.gmra.mrb[2].mxu0 %vm1823_vm0, %v21_v9  ;;  %v152_v0 = vshra.s32 %v1501_v60, 5  ;;  %vm1518_vm10 = vcmp.eq.s32.totalorder %v151_v63, %v1373_v22  ;;  %v189_v51 = vand.u32 7, %v1379_v24 }
  0x11   :  { %v1853_v2 = vsel %vm1518_vm10, 4294967295, %v1852_v2  ;;  %v153_v8 = vshra.s32 %v1530_v4, 5  ;;  %v154_v9 = vshra.s32 %v1533_v5, 5 }
  0x12   :  { %vm1525_vm11 = vcmp.eq.s32.totalorder %v152_v0, %v1373_v22 }
  0x13   :  { %v1855_v3 = vsel %vm1525_vm11, 4294967295, %v1854_v3  ;;  %vm1550_vm12 = vcmp.eq.s32.totalorder %v153_v8, %v1373_v22  ;;  %vm1557_vm13 = vcmp.eq.s32.totalorder %v154_v9, %v1373_v22 }
  0x14   :  { %v1857_v16 = vsel %vm1550_vm12, 4294967295, %v1856_v16 }
  0xdf   :  { %v1347_v10 = vpop.f32.mrb[0].mxu0 }
  0xe0   :  { %v105_v11 = vpop.f32.mrb[1].mxu0 }
  0xe1   :  { %v1350_v12 = vpack.i.bf16 %v1347_v10, %v105_v11  ;;  %982 = vmatprep.mubr.msk.f32.mxu1 %vm1823_vm0, %v105_v11 }
  0xe3   :  { %1229 = vrot.lane.b32.xlu0 %v1350_v12, %s1288_s30  ;;  %v1354_v13 = vpop.f32.mrb[2].mxu0 }
  0xe4   :  { %v1356_v14 = vpop.f32.mrb[3].mxu0 }
  0xe5   :  { %v1360_v15 = vpack.i.bf16 %v1354_v13, %v1356_v14 }
  0xe7   :  { %1234 = vrot.lane.b32.xlu0 %v1360_v15, %s1288_s30 }
 0x155   :  { %v1230_v27 = vpop.permute.xlu0 %1229 }
 0x156   :  { %v1403_v32 = vunpack.i.h.bf16 %v1230_v27  ;;  %v1405_v33 = vunpack.i.l.bf16 %v1230_v27  ;;  %v1858_v27 = vmov 0 }
 0x157   :  { %v1859_v27 = vsel %vm1557_vm13, 4294967295, %v1858_v27 }
 0x158   :  { %v264_v34 = vsel %vm1390_vm1, %v1405_v33, 0.0  ;;  %v265_v35 = vsel %vm1397_vm2, %v1403_v32, 0.0  ;;  %v268_v52 = vsel %vm1452_vm6, %v1405_v33, 0.0  ;;  %v269_v53 = vsel %vm1459_vm7, %v1403_v32, 0.0 }
 0x159   :  { %v1086_v38 = vpack.c.bf16 %v265_v35, %v264_v34  ;;  %v1235_v39 = vpop.permute.xlu0 %1234  ;;  %v1098_v56 = vpack.c.bf16 %v269_v53, %v268_v52  ;;  %v272_v6 = vsel %vm1518_vm10, %v1405_v33, 0.0  ;;  %v273_v7 = vsel %vm1525_vm11, %v1403_v32, 0.0 }
 0x15a   :  { %v1435_v43 = vunpack.i.h.bf16 %v1235_v39  ;;  %v1437_v44 = vunpack.i.l.bf16 %v1235_v39  ;;  %v1110_v11 = vpack.c.bf16 %v273_v7, %v272_v6  ;;  %v1562_v34 = vadd.s32 96, %v1363_v17 }
 0x15b   :  { %1088 = vmatprep.subr.msk.bf16.mxu1 %vm1415_vm3, %v1086_v38  ;;  %v1565_v35 = vadd.s32 104, %v1363_v17  ;;  %v1860_v52 = vmov 0  ;;  %v1862_v53 = vmov 0 }
 0x15c   :  { %1091 = vmatpush3.bf16.xpose.msk.msra.mxu1 %vm1415_vm3, %v1086_v38  ;;  %v266_v45 = vsel %vm1423_vm4, %v1437_v44, 0.0  ;;  %v267_v46 = vsel %vm1430_vm5, %v1435_v43, 0.0  ;;  %v270_v61 = vsel %vm1486_vm8, %v1437_v44, 0.0  ;;  %v271_v62 = vsel %vm1493_vm9, %v1435_v43, 0.0 }
 0x15d   :  { %v1092_v48 = vpack.c.bf16 %v267_v46, %v266_v45  ;;  %v1104_v1 = vpack.c.bf16 %v271_v62, %v270_v61  ;;  %v274_v38 = vsel %vm1550_vm12, %v1437_v44, 0.0  ;;  %v275_v39 = vsel %vm1557_vm13, %v1435_v43, 0.0 }
 0x15e   :  { %v155_v45 = vshra.s32 %v1562_v34, 5  ;;  %v156_v46 = vshra.s32 %v1565_v35, 5  ;;  %v1597_v61 = vadd.s32 120, %v1363_v17 }
 0x15f   :  { %1094 = vmatprep.subr.msk.bf16.mxu1 %vm1415_vm3, %v1092_v48 }
 0x160   :  { %vm1582_vm14 = vcmp.eq.s32.totalorder %v155_v45, %v1373_v22  ;;  %vm1589_vm15 = vcmp.eq.s32.totalorder %v156_v46, %v1373_v22  ;;  %v158_v7 = vshra.s32 %v1597_v61, 5 }
 0x161   :  { %v1861_v52 = vsel %vm1582_vm14, 4294967295, %v1860_v52  ;;  %v1863_v53 = vsel %vm1589_vm15, 4294967295, %v1862_v53  ;;  %v276_v62 = vsel %vm1582_vm14, %v1405_v33, 0.0  ;;  %v1864_v33 = vmov 0 }
 0x162   :  { %vm1868_vm14 = vcmask 261120  }
 0x163   :  { %vm1869_vm13 = vmmov %vm1868_vm14 }
 0x164   :  { %1097 = vmatpush3.bf16.xpose.msk.msra.mxu1 %vm1415_vm3, %v1092_v48  ;;  %v1116_v48 = vpack.c.bf16 %v275_v39, %v274_v38 }
 0x165   :  { %1100 = vmatprep.subr.msk.bf16.mxu1 %vm1415_vm3, %v1098_v56 }
 0x16c   :  { %1103 = vmatpush3.bf16.xpose.msk.msra.mxu1 %vm1415_vm3, %v1098_v56  ;;  %v1594_v56 = vadd.s32 112, %v1363_v17 }
 0x16d   :  { %1106 = vmatprep.subr.msk.bf16.mxu1 %vm1415_vm3, %v1104_v1 }
 0x16e   :  { %v157_v6 = vshra.s32 %v1594_v56, 5 }
 0x170   :  { %vm1614_vm0 = vcmp.eq.s32.totalorder %v157_v6, %v1373_v22 }
 0x171   :  { %v1865_v33 = vsel %vm1614_vm0, 4294967295, %v1864_v33  ;;  %v278_v38 = vsel %vm1614_vm0, %v1437_v44, 0.0  ;;  %vm1870_vm0 = vmmov %vm1869_vm13  ;;  %v180_v44 = vshra.s32 %v1379_v24, 3 }
 0x174   :  { %1109 = vmatpush3.bf16.xpose.msk.msra.mxu1 %vm1415_vm3, %v1104_v1  ;;  %v277_v1 = vsel %vm1589_vm15, %v1403_v32, 0.0  ;;  %vm1621_vm15 = vcmp.eq.s32.totalorder %v158_v7, %v1373_v22  ;;  %v1866_v32 = vmov 0  ;;  %v1644_v22 = vshra.s32 %v1368_v19, 5 }
 0x175   :  { %1112 = vmatprep.subr.msk.bf16.mxu1 %vm1415_vm3, %v1110_v11  ;;  %v1867_v32 = vsel %vm1621_vm15, 4294967295, %v1866_v32  ;;  %v279_v39 = vsel %vm1621_vm15, %v1435_v43, 0.0 }
 0x176   :  { %vm200_vm15 = vcmp.eq.s32.totalorder %v143_v20, %v1644_v22  ;;  %vm204_vm11 = vcmp.eq.s32.totalorder %v147_v37, %v1644_v22  ;;  %vm205_vm10 = vcmp.eq.s32.totalorder %v148_v42, %v1644_v22  ;;  %v188_v37 = vand.u32 7, %v1376_v23 }
 0x177   :  { %vm1142_vm9 = vmpackc.low %vm205_vm10, %vm204_vm11 }
 0x17c   :  { %1115 = vmatpush3.bf16.xpose.msk.msra.mxu1 %vm1415_vm3, %v1110_v11  ;;  %v1122_v11 = vpack.c.bf16 %v277_v1, %v276_v62 }
 0x17d   :  { %1118 = vmatprep.subr.msk.bf16.mxu1 %vm1415_vm3, %v1116_v48 }
 0x184   :  { %1121 = vmatpush3.bf16.xpose.msk.msra.mxu1 %vm1415_vm3, %v1116_v48  ;;  %v1128_v48 = vpack.c.bf16 %v279_v39, %v278_v38 }
 0x185   :  { %1124 = vmatprep.subr.msk.bf16.mxu1 %vm1415_vm3, %v1122_v11 }
 0x18c   :  { %1127 = vmatpush3.bf16.xpose.msk.msra.mxu1 %vm1415_vm3, %v1122_v11 }
 0x18d   :  { %1130 = vmatprep.subr.msk.bf16.mxu1 %vm1415_vm3, %v1128_v48 }
 0x194   :  { %1133 = vmatpush3.bf16.xpose.msk.msra.mxu1 %vm1415_vm3, %v1128_v48  ;;  %vm201_vm3 = vcmp.eq.s32.totalorder %v144_v21, %v1644_v22  ;;  %v186_v21 = vand.u32 7, %v1363_v17 }
 0x195   :  { %1215 = vmatprep.subr.bf16.mxu1 %v1214_v47 }
 0x19b   :  { %983 = vmatmul.mubr.msk.f32.vlgmr.msra.gmra.mrb[0].mxu1 %vm1868_vm14, %v1347_v10  ;;  %vm202_vm14 = vcmp.eq.s32.totalorder %v145_v30, %v1644_v22  ;;  %v1289_v10 = vmov 1.0|1.0   ;;  %v187_v30 = vand.u32 7, %v1366_v18 }
 0x19c   :  { %985 = vmatprep.mubr.msk.f32.mxu1 %vm1869_vm13, %v1356_v14  ;;  %vm203_vm13 = vcmp.eq.s32.totalorder %v146_v31, %v1644_v22  ;;  %v177_v14 = vshra.s32 %v1363_v17, 3  ;;  %1217 = vmatpush3.bf16.msra.mxu1 %v1214_v47 }
 0x19d   :  { %vm1138_vm12 = vmpackc.low %vm203_vm13, %vm202_vm14 }
 0x19f   :  { %986 = vmatmul.mubr.msk.f32.gmra.mrb[2].mxu1 %vm1870_vm0, %v1354_v13  ;;  %vm1134_vm0 = vmpackc.low %vm201_vm3, %vm200_vm15  ;;  %vm206_vm15 = vcmp.eq.s32.totalorder %v149_v54, %v1644_v22  ;;  %vm207_vm3 = vcmp.eq.s32.totalorder %v150_v55, %v1644_v22  ;;  %v176_v13 = vand.u32 31, %v1368_v19  ;;  %v179_v19 = vshra.s32 %v1376_v23, 3 }
 0x1a0   :  { %1135 = vmatprep.subr.msk.bf16.mxu0 %vm1134_vm0, %v1289_v10  ;;  %vm1146_vm14 = vmpackc.low %vm207_vm3, %vm206_vm15 }
 0x1a1   :  { %1137 = vmatpush3.bf16.msk.msra.mxu0 %vm1134_vm0, %v1289_v10  ;;  %v181_v20 = vshra.s32 %v176_v13, 3  ;;  %v190_v25 = vand.u32 7, %v176_v13 }
 0x1a2   :  { %1139 = vmatprep.subr.msk.bf16.mxu0 %vm1138_vm12, %v1289_v10 }
 0x1a3   :  { %vm1683_vm10 = vcmp.eq.s32.totalorder %v177_v14, %v181_v20  ;;  %vm1701_vm13 = vcmp.ge.s32.totalorder %v187_v30, %v190_v25  ;;  %vm1706_vm0 = vcmp.eq.s32.totalorder %v179_v19, %v181_v20  ;;  %vm193_vm15 = vcmp.ge.s32.totalorder %v188_v37, %v190_v25  ;;  %v855_v37 = vld [vmem:[%s1821_s3] ss:$0 sm:$0xff]  ;;  %s1264_s3 = scalar_lea.vmem %s773_s15, 512 }
 0x1a4   :  { %p1265_p0 = scmp.ne.s32.totalorder %s773_s15, %s1264_s3  ;;  %p1270_p2 = scmp.lt.s32.totalorder %s1264_s3, %s1264_s3 }
 0x1a5   :  { %1141 = vmatpush3.bf16.msk.msra.mxu0 %vm1138_vm12, %v1289_v10  ;;  %vm1697_vm12 = vcmp.eq.s32.totalorder %v178_v26, %v181_v20 }
 0x1a6   :  { %1143 = vmatprep.subr.msk.bf16.mxu0 %vm1142_vm9, %v1289_v10  ;;  %vm196_vm3 = vmand %vm1697_vm12, %vm1701_vm13  ;;  %vm209_vm12 = vcmp.eq.s32.totalorder %v152_v0, %v1644_v22  ;;  %p1271_p3 = por %p1270_p2, %p1269_p1 }
 0x1a8   :  { %p1272_p4 = pnand %p1271_p3, %p1265_p0 }
 0x1a9   :  { %1145 = vmatpush3.bf16.msk.msra.mxu0 %vm1142_vm9, %v1289_v10  ;;  %vm1687_vm9 = vcmp.ge.s32.totalorder %v186_v21, %v190_v25 }
 0x1aa   :  { %1147 = vmatprep.subr.msk.bf16.mxu0 %vm1146_vm14, %v1289_v10  ;;  %vm195_vm11 = vmand %vm1683_vm10, %vm1687_vm9  ;;  %vm185_vm10 = vcmp.eq.s32.totalorder %v180_v44, %v181_v20  ;;  %vm194_vm9 = vcmp.ge.s32.totalorder %v189_v51, %v190_v25 }
 0x1ab   :  { %vm198_vm8 = vmand %vm185_vm10, %vm194_vm9  ;;  %vm214_vm9 = vcmp.eq.s32.totalorder %v157_v6, %v1644_v22 }
 0x1ad   :  { %1149 = vmatpush3.bf16.msk.msra.mxu0 %vm1146_vm14, %v1289_v10  ;;  %vm197_vm14 = vmand %vm1706_vm0, %vm193_vm15  ;;  %vm210_vm0 = vcmp.eq.s32.totalorder %v153_v8, %v1644_v22 }
 0x26e   :  { %v984_v42 = vpop.f32.mrb[0].mxu1 }
 0x26f   :  { %v430_v43 = vpop.f32.mrb[1].mxu1  ;;  %v450_v54 = vmul.f32 0.17677669, %v984_v42 }
 0x270   :  { %v449_v50 = vmul.f32 0.17677669, %v430_v43 }
 0x271   :  { %v454_v39 = vsel %vm196_vm3, %v450_v54, -inf  ;;  %vm212_vm3 = vcmp.eq.s32.totalorder %v155_v45, %v1644_v22 }
 0x272   :  { %v987_v55 = vpop.f32.mrb[2].mxu1  ;;  %v453_v62 = vsel %vm195_vm11, %v449_v50, -inf  ;;  %vm208_vm11 = vcmp.eq.s32.totalorder %v151_v63, %v1644_v22 }
 0x273   :  { %457 = vmax.xlane.f32.xlu1 %v453_v62  ;;  %v440_v1 = vpop.f32.mrb[3].mxu1  ;;  %v452_v38 = vmul.f32 0.17677669, %v987_v55  ;;  %vm1150_vm13 = vmpackc.low %vm209_vm12, %vm208_vm11  ;;  %vm215_vm11 = vcmp.eq.s32.totalorder %v158_v7, %v1644_v22 }
 0x274   :  { %v451_v11 = vmul.f32 0.17677669, %v440_v1  ;;  %1151 = vmatprep.subr.msk.bf16.mxu0 %vm1150_vm13, %v1289_v10  ;;  %vm1162_vm12 = vmpackc.low %vm215_vm11, %vm214_vm9  ;;  %vm1888_vm9 = vnez %v1863_v53 }
 0x275   :  { %v456_v24 = vsel %vm198_vm8, %v452_v38, -inf  ;;  %1153 = vmatpush3.bf16.msk.msra.mxu0 %vm1150_vm13, %v1289_v10  ;;  %vm211_vm8 = vcmp.eq.s32.totalorder %v154_v9, %v1644_v22  ;;  %vm1167_vm13 = vmpackc.low %vm1397_vm2, %vm1390_vm1  ;;  %vm1881_vm2 = vnez %v1849_v57  ;;  %v1218_v57 = vpack.c.bf16 %v658_v49, %v657_v41 }
 0x276   :  { %v455_v48 = vsel %vm197_vm14, %v451_v11, -inf  ;;  %vm1154_vm15 = vmpackc.low %vm211_vm8, %vm210_vm0  ;;  %vm213_vm14 = vcmp.eq.s32.totalorder %v156_v46, %v1644_v22  ;;  %vm1882_vm8 = vnez %v1851_v58 }
 0x277   :  { %459 = vmax.xlane.f32.xlu1 %v454_v39  ;;  %461 = vmax.xlane.f32.xlu0 %v455_v48  ;;  %vm1158_vm10 = vmpackc.low %vm213_vm14, %vm212_vm3  ;;  %vm1885_vm14 = vnez %v1857_v16 }
 0x278   :  { %1155 = vmatprep.subr.msk.bf16.mxu0 %vm1154_vm15, %v1289_v10  ;;  %vm1173_vm0 = vmpackc.low %vm1430_vm5, %vm1423_vm4  ;;  %vm1883_vm4 = vnez %v1853_v2  ;;  %vm1884_vm5 = vnez %v1855_v3  ;;  %1219 = vmatprep.subr.bf16.mxu1 %v1218_v57 }
 0x279   :  { %1157 = vmatpush3.bf16.msk.msra.mxu0 %vm1154_vm15, %v1289_v10  ;;  %vm1179_vm1 = vmpackc.low %vm1459_vm7, %vm1452_vm6  ;;  %vm1886_vm6 = vnez %v1859_v27  ;;  %1221 = vmatpush3.bf16.msra.mxu1 %v1218_v57 }
 0x27a   :  { %1159 = vmatprep.subr.msk.bf16.mxu0 %vm1158_vm10, %v1289_v10  ;;  %vm1185_vm15 = vmpackc.low %vm1882_vm8, %vm1881_vm2 }
 0x27b   :  { %463 = vmax.xlane.f32.xlu1 %v456_v24  ;;  %vm1191_vm3 = vmpackc.low %vm1884_vm5, %vm1883_vm4 }
 0x27c   :  { %vm1197_vm7 = vmpackc.low %vm1886_vm6, %vm1885_vm14 }
 0x27d   :  { %1161 = vmatpush3.bf16.msk.msra.mxu0 %vm1158_vm10, %v1289_v10  ;;  %vm1887_vm10 = vnez %v1861_v52 }
 0x27e   :  { %1163 = vmatprep.subr.msk.bf16.mxu0 %vm1162_vm12, %v1289_v10  ;;  %vm1203_vm11 = vmpackc.low %vm1888_vm9, %vm1887_vm10 }
 0x281   :  { %1165 = vmatpush3.bf16.msk.msra.mxu0 %vm1162_vm12, %v1289_v10  ;;  %vm1889_vm12 = vnez %v1865_v33 }
 0x28c   :  { %1239 = vrot.lane.b32.xlu1 %v1350_v12, %s1290_s0 }
 0x290   :  { %1244 = vrot.lane.b32.xlu1 %v1360_v15, %s1290_s0 }
 0x300   :  { %v458_v12 = vpop.xlane.xlu1 %457 }
 0x301   :  { %v465_v59 = vsub.f32 %v453_v62, %v458_v12 }
 0x303   :  { %v469_v60 = vmul.f32 1.442695, %v465_v59 }
 0x304   :  { %v460_v63 = vpop.xlane.xlu1 %459  ;;  %v462_v0 = vpop.xlane.xlu0 %461 }
 0x305   :  { %1248 = vpow2.f32 %v469_v60  ;;  %v466_v4 = vsub.f32 %v454_v39, %v460_v63  ;;  %v467_v5 = vsub.f32 %v455_v48, %v462_v0 }
 0x307   :  { %v471_v8 = vmul.f32 1.442695, %v466_v4  ;;  %v473_v9 = vmul.f32 1.442695, %v467_v5 }
 0x308   :  { %v464_v34 = vpop.xlane.xlu1 %463 }
 0x309   :  { %1250 = vpow2.f32 %v471_v8  ;;  %v468_v15 = vsub.f32 %v456_v24, %v464_v34 }
 0x30a   :  { %1252 = vpow2.f32 %v473_v9 }
 0x30b   :  { %v475_v35 = vmul.f32 1.442695, %v468_v15 }
 0x30c   :  { %v1240_v45 = vpop.permute.xlu1 %1239 }
 0x30d   :  { %1254 = vpow2.f32 %v475_v35  ;;  %v1242_v46 = vunpack.i.h.bf16 %v1240_v45  ;;  %v1241_v56 = vunpack.i.l.bf16 %v1240_v45 }
 0x30f   :  { %v1249_v61 = vpop.eup %1248  ;;  %v1166_v6 = vpack.c.bf16 %v1242_v46, %v1241_v56 }
 0x310   :  { %1020 = vmatprep.mubr.f32.mxu0 %v1249_v61  ;;  %v1245_v7 = vpop.permute.xlu1 %1244 }
 0x311   :  { %v1247_v22 = vunpack.i.h.bf16 %v1245_v7  ;;  %v1246_v10 = vunpack.i.l.bf16 %v1245_v7  ;;  %1168 = vmatprep.subr.msk.bf16.mxu0 %vm1167_vm13, %v1166_v6 }
 0x313   :  { %v1251_v13 = vpop.eup %1250  ;;  %v1172_v14 = vpack.c.bf16 %v1247_v22, %v1246_v10 }
 0x314   :  { %v1253_v20 = vpop.eup %1252  ;;  %1021 = vmatmul.mubr.f32.vlgmr.msra.gmra.mrb[4].mxu0 %v1251_v13 }
 0x315   :  { %1171 = vmatpush3.bf16.msk.msra.mxu0 %vm1167_vm13, %v1166_v6  ;;  %1023 = vmatprep.mubr.f32.mxu0 %v1253_v20  ;;  %vm1890_vm13 = vnez %v1867_v32 }
 0x316   :  { %1174 = vmatprep.subr.msk.bf16.mxu0 %vm1173_vm0, %v1172_v14 }
 0x317   :  { %v1255_v28 = vpop.eup %1254 }
 0x318   :  { %1024 = vmatmul.mubr.f32.gmra.mrb[6].mxu0 %v1255_v28 }
 0x319   :  { %1177 = vmatpush3.bf16.msk.msra.mxu0 %vm1173_vm0, %v1172_v14  ;;  %vm1209_vm0 = vmpackc.low %vm1890_vm13, %vm1889_vm12 }
 0x31a   :  { %1180 = vmatprep.subr.msk.bf16.mxu0 %vm1179_vm1, %v1166_v6 }
 0x31d   :  { %1183 = vmatpush3.bf16.msk.msra.mxu0 %vm1179_vm1, %v1166_v6  ;;  %vm1891_vm1 = vcmask 261120  }
 0x31e   :  { %1186 = vmatprep.subr.msk.bf16.mxu0 %vm1185_vm15, %v1172_v14  ;;  %vm1892_vm2 = vmmov %vm1891_vm1 }
 0x31f   :  { %vm1893_vm8 = vmmov %vm1891_vm1 }
 0x320   :  { %vm1895_vm4 = vmmov %vm1891_vm1 }
 0x321   :  { %1189 = vmatpush3.bf16.msk.msra.mxu0 %vm1185_vm15, %v1172_v14  ;;  %vm1894_vm15 = vmmov %vm1891_vm1 }
 0x322   :  { %1192 = vmatprep.subr.msk.bf16.mxu0 %vm1191_vm3, %v1166_v6  ;;  %vm1896_vm5 = vmmov %vm1891_vm1 }
 0x323   :  { %vm1898_vm14 = vmmov %vm1891_vm1 }
 0x325   :  { %1195 = vmatpush3.bf16.msk.msra.mxu0 %vm1191_vm3, %v1166_v6  ;;  %vm1897_vm3 = vmmov %vm1891_vm1 }
 0x326   :  { %1198 = vmatprep.subr.msk.bf16.mxu0 %vm1197_vm7, %v1172_v14 }
 0x329   :  { %1201 = vmatpush3.bf16.msk.msra.mxu0 %vm1197_vm7, %v1172_v14 }
 0x32a   :  { %1204 = vmatprep.subr.msk.bf16.mxu0 %vm1203_vm11, %v1166_v6 }
 0x32d   :  { %1207 = vmatpush3.bf16.msk.msra.mxu0 %vm1203_vm11, %v1166_v6 }
 0x32e   :  { %1210 = vmatprep.subr.msk.bf16.mxu0 %vm1209_vm0, %v1172_v14 }
 0x331   :  { %1213 = vmatpush3.bf16.msk.msra.mxu0 %vm1209_vm0, %v1172_v14 }
 0x3e7   :  { %v1022_v58 = vpop.f32.mrb[4].mxu0 }
 0x3e8   :  { %1256 = vrcp.f32 %v1022_v58  ;;  %v543_v2 = vpop.f32.mrb[5].mxu0 }
 0x3e9   :  { %1258 = vrcp.f32 %v543_v2 }
 0x3eb   :  { %v1025_v3 = vpop.f32.mrb[6].mxu0 }
 0x3ec   :  { %1260 = vrcp.f32 %v1025_v3  ;;  %v553_v16 = vpop.f32.mrb[7].mxu0 }
 0x3ed   :  { %1262 = vrcp.f32 %v553_v16 }
 0x3f2   :  { %v1257_v27 = vpop.eup %1256 }
 0x3f3   :  { %v1259_v52 = vpop.eup %1258  ;;  %v567_v33 = vmul.f32 %v1257_v27, %v1251_v13 }
 0x3f4   :  { %v566_v53 = vmul.f32 %v1259_v52, %v1249_v61 }
 0x3f6   :  { %v1261_v32 = vpop.eup %1260  ;;  %1058 = vmatprep.mubr.f32.mxu0 %v566_v53 }
 0x3f7   :  { %v1263_v21 = vpop.eup %1262  ;;  %1059 = vmatmul.mubr.f32.vlgmr.msra.gmra.mrb[8].mxu0 %v567_v33  ;;  %v569_v26 = vmul.f32 %v1261_v32, %v1255_v28 }
 0x3f8   :  { %v568_v25 = vmul.f32 %v1263_v21, %v1253_v20 }
 0x3fa   :  { %1061 = vmatprep.mubr.f32.mxu0 %v568_v25 }
 0x3fb   :  { %1062 = vmatmul.mubr.f32.gmra.mrb[10].mxu0 %v569_v26 }
 0x4ca   :  { %v1060_v30 = vpop.f32.mrb[8].mxu0 }
 0x4cb   :  { %v636_v31 = vpop.f32.mrb[9].mxu0 }
 0x4cc   :  { %1072 = vmatprep.mubr.msk.f32.mxu1 %vm1891_vm1, %v636_v31 }
 0x4cd   :  { %1073 = vmatmul.mubr.msk.f32.vlgmr.msra.gmra.mrb[4].mxu1 %vm1892_vm2, %v1060_v30 }
 0x4ce   :  { %v1063_v36 = vpop.f32.mrb[10].mxu0 }
 0x4cf   :  { %v646_v19 = vpop.f32.mrb[11].mxu0 }
 0x4d0   :  { %1075 = vmatprep.mubr.msk.f32.mxu1 %vm1893_vm8, %v646_v19 }
 0x4d1   :  { %1076 = vmatmul.mubr.msk.f32.gmra.mrb[6].mxu1 %vm1894_vm15, %v1063_v36 }
 0x5a0   :  { %v1074_v42 = vpop.f32.mrb[4].mxu1 }
 0x5a1   :  { %v750_v43 = vadd.f32 %v1074_v42, %v855_v37  ;;  %v744_v17 = vpop.f32.mrb[5].mxu1 }
 0x5a2   :  { %v745_v18 = vadd.f32 %v855_v37, %v744_v17 }
 0x5a3   :  { %764 = vst.msk [vmem:[#allocation2 + $0x8] sm:$0xff] %vm1895_vm4, %v750_v43 }
 0x5a4   :  { %763 = vst.msk [vmem:[#allocation2] sm:$0xff] %vm1896_vm5, %v745_v18  ;;  %v1077_v44 = vpop.f32.mrb[6].mxu1 }
 0x5a5   :  { %v760_v50 = vadd.f32 %v1077_v44, %v855_v37  ;;  %v754_v23 = vpop.f32.mrb[7].mxu1 }
 0x5a6   :  { %v755_v51 = vadd.f32 %v855_v37, %v754_v23 }
 0x5a7   :  { %766 = vst.msk [vmem:[#allocation2 + $0x18] sm:$0xff] %vm1897_vm3, %v760_v50 }
 0x5a8   :  { %765 = vst.msk [vmem:[#allocation2 + $0x10] sm:$0xff] %vm1898_vm14, %v755_v51 }
 0x5a9   :  { %1275 = shalt.err (!%p1272_p4)
}
 0x5aa   :  { %s1276_s18 = scalar_lea.hbm %s1822_s4, 512 }
 0x5ab   :  { %p1277_p5 = scmp.ne.s32.totalorder %s1822_s4, %s1276_s18  ;;  %p1280_p6 = scmp.lt.u32.totalorder %s1276_s18, %s1822_s4 }
 0x5ad   :  { %p1282_p7 = pnand %p1280_p6, %p1277_p5 }
 0x5af   :  { %1285 = shalt.err (!%p1282_p7)
}
 0x5b0   :  { %s1292_s23 = smov 128   ;;  %s1293_s24 = smov 8  }
 0x5b1   :  { %778 = dma.vmem_to_hbm [thread:$0]  %s773_s15, 512, %s1822_s4, [#allocation3], %s1292_s23, %s1292_s23, %s1293_s24  }
 0x5b2   :  { %1286 = dma.done.wait [#allocation3], 512  }
 0x5b3   :  { %1287 = vsyncadd [#allocation3], 4294966784 }
 0x5b4   :  { %782 = vsyncpa [#allocation3], 1 }

</bundles_post_ra>
